<compile_context>
chip_gen: v6e
topology: v6e:2x2x1
jax: 0.10.0
libtpu: 0.0.40
codegen_flags: <defaults>
</compile_context>

<pallas_src>
import functools

import jax
import jax.numpy as jnp
from jax.experimental import pallas as pl
from jax.experimental.pallas import tpu as pltpu


def se_weight_kernel(x_ref, w1t_ref, b1_ref, w2t_ref, b2_ref, out_ref, acc_ref,
                     *, hw_total, b_hw):
    # x_ref  : (bn, C, b_hw)   w1t_ref: (C, Cr)   b1_ref: (1, Cr)
    # w2t_ref: (Cr, C)         b2_ref : (1, C)    out_ref: (bn, C)
    # acc_ref: (bn, C) f32 scratch, persistent across the HW grid axis.
    hw_step = pl.program_id(1)

    @pl.when(hw_step == 0)
    def _():
        acc_ref[...] = jnp.zeros_like(acc_ref)

    x = x_ref[...]                                            # (bn, C, b_hw)
    if hw_total % b_hw != 0:
        # Mask out-of-bounds lanes of the last (partial) HW tile. Static
        # condition: no masking code is emitted when HW divides evenly.
        lane = jax.lax.broadcasted_iota(jnp.int32, x.shape, 2)
        x = jnp.where(hw_step * b_hw + lane < hw_total, x, 0)

    # Per-tile partial sum, accumulated in f32 (no whole-block upcast kept live).
    acc_ref[...] += jnp.sum(x, axis=-1, dtype=jnp.float32)    # (bn, C)

    @pl.when(hw_step == pl.num_programs(1) - 1)
    def _():
        # AdaptiveAvgPool2d(1): divide the accumulated sum by the TRUE HW.
        pooled = acc_ref[...] * (1.0 / hw_total)              # (bn, C) f32

        # fc1: 1x1 conv on a 1x1 map == matmul; weights pre-transposed (C, Cr).
        h = jnp.dot(pooled, w1t_ref[...],
                    preferred_element_type=jnp.float32) + b1_ref[...]
        h = jnp.maximum(h, 0.0)                               # ReLU (f32)

        # fc2: back to C channels; weights pre-transposed (Cr, C).
        o = jnp.dot(h, w2t_ref[...],
                    preferred_element_type=jnp.float32) + b2_ref[...]

        out_ref[...] = jax.nn.sigmoid(o).astype(out_ref.dtype)


def se_weight_module(x, w1, b1, w2, b2, *, bn=None, b_hw=None):
    """x: (N, C, H, W); w1: (Cr, C); b1: (Cr,); w2: (C, Cr); b2: (C,).
    Returns attention weights of shape (N, C, 1, 1), same dtype as x."""
    N, C, H, W = x.shape
    Cr = w1.shape[0]
    HW = H * W
    itemsize = jnp.dtype(x.dtype).itemsize
    x_flat = x.reshape(N, C, HW)

    # ~4 MiB per input buffer: double-buffered x tile stays well inside the
    # default scoped-VMEM limit on v5e (16 MiB) and v6e/v7x (32 MiB).
    budget = 4 * 1024 * 1024

    # Batch tile: up to 8 rows (sublane-friendly); shrink if C is so large
    # that even a 128-lane tile would blow the budget.
    if bn is None:
        bn = min(N, 8)
        while bn > 1 and bn * C * 128 * itemsize > budget:
            bn //= 2

    # HW tile: whole HW in one step when it fits (no masking, single grid
    # step); otherwise the largest 128-lane-aligned tile inside the budget.
    if b_hw is None:
        if bn * C * HW * itemsize <= budget:
            b_hw = HW
        else:
            lanes = max(128, (budget // (bn * C * itemsize)) // 128 * 128)
            aligned_hw = (HW // 128) * 128
            b_hw = int(min(lanes, aligned_hw if aligned_hw else HW))

    grid = (pl.cdiv(N, bn), pl.cdiv(HW, b_hw))

    # Pre-transpose weights in the wrapper (free, folded by XLA) so the kernel
    # contracts without an in-kernel transpose.
    w1t = w1.T                                             # (C, Cr)
    w2t = w2.T                                             # (Cr, C)

    kernel = functools.partial(se_weight_kernel, hw_total=HW, b_hw=b_hw)

    cost = pl.CostEstimate(
        flops=N * C * HW                                   # pooling adds
        + 4 * N * C * Cr,                                  # two tiny matmuls
        transcendentals=N * C,                             # sigmoid
        bytes_accessed=N * C * HW * itemsize               # dominant: pool read
        + (C * Cr * 2 + C + Cr) * 4 + N * C * itemsize,
    )

    out = pl.pallas_call(
        kernel,
        out_shape=jax.ShapeDtypeStruct((N, C), x.dtype),
        grid_spec=pltpu.PrefetchScalarGridSpec(
            num_scalar_prefetch=0,
            grid=grid,
            in_specs=[
                pl.BlockSpec((bn, C, b_hw), lambda i, j: (i, 0, j)),   # x tiles
                pl.BlockSpec((C, Cr), lambda i, j: (0, 0)),            # w1.T
                pl.BlockSpec((1, Cr), lambda i, j: (0, 0)),            # b1
                pl.BlockSpec((Cr, C), lambda i, j: (0, 0)),            # w2.T
                pl.BlockSpec((1, C), lambda i, j: (0, 0)),             # b2
            ],
            out_specs=pl.BlockSpec((bn, C), lambda i, j: (i, 0)),
            scratch_shapes=[pltpu.VMEM((bn, C), jnp.float32)],
        ),
        compiler_params=pltpu.CompilerParams(
            dimension_semantics=("parallel", "arbitrary"),
        ),
        cost_estimate=cost,
    )(x_flat, w1t, b1.reshape(1, Cr), w2t, b2.reshape(1, C))

    return out.reshape(N, C, 1, 1)


def se_weight_reference(x, w1, b1, w2, b2):
    pooled = jnp.mean(x.astype(jnp.float32), axis=(2, 3))    # (N, C)
    h = jnp.maximum(pooled @ w1.T + b1, 0.0)                  # (N, Cr)
    o = h @ w2.T + b2                                         # (N, C)
    return jax.nn.sigmoid(o).astype(x.dtype).reshape(*o.shape, 1, 1)


if __name__ == "__main__":
    # Small shapes consistent with the module: channels divisible by
    # reduction=16 so the hidden dim is >= 1.
    N, C, H, W = 2, 32, 16, 16
    reduction = 16
    Cr = C // reduction

    key = jax.random.PRNGKey(0)
    kx, k1, kb1, k2, kb2 = jax.random.split(key, 5)

    x = jax.random.normal(kx, (N, C, H, W), dtype=jnp.float32)

    # Deterministic synthetic parameters (shapes match Conv2d(C, Cr, 1) and
    # Conv2d(Cr, C, 1); 1x1 kernels squeezed to 2-D).
    w1 = jax.random.normal(k1, (Cr, C), dtype=jnp.float32) * (1.0 / jnp.sqrt(C))
    b1 = jax.random.normal(kb1, (Cr,), dtype=jnp.float32) * 0.1
    w2 = jax.random.normal(k2, (C, Cr), dtype=jnp.float32) * (1.0 / jnp.sqrt(Cr))
    b2 = jax.random.normal(kb2, (C,), dtype=jnp.float32) * 0.1

    ref = se_weight_reference(x, w1, b1, w2, b2)

    # 1) Auto tile selection: single full-HW block, one grid step over HW.
    out = jax.block_until_ready(se_weight_module(x, w1, b1, w2, b2))
    assert out.shape == (N, C, 1, 1), out.shape
    assert jnp.allclose(out, ref, atol=1e-5, rtol=1e-5), "mismatch (auto tiles)"

    # 2) Forced b_hw=128: exercises the multi-step HW accumulation path.
    out2 = jax.block_until_ready(se_weight_module(x, w1, b1, w2, b2, b_hw=128))
    assert jnp.allclose(out2, ref, atol=1e-5, rtol=1e-5), "mismatch (b_hw=128)"

    # 3) Ragged spatial size (HW=130, not a multiple of 128): exercises the
    #    masked partial-tile path and a non-multiple-of-8 batch tile.
    N3, H3, W3 = 3, 10, 13
    x3 = jax.random.normal(jax.random.PRNGKey(1), (N3, C, H3, W3),
                           dtype=jnp.float32)
    ref3 = se_weight_reference(x3, w1, b1, w2, b2)
    out3 = jax.block_until_ready(
        se_weight_module(x3, w1, b1, w2, b2, b_hw=128))
    assert jnp.allclose(out3, ref3, atol=1e-5, rtol=1e-5), "mismatch (ragged HW)"

    print("KERNEL_OK")
</pallas_src>

<mosaic_0001>
module attributes {stable_mosaic.version = 11 : i64} {
  func.func @se_weight_kernel(%arg0: i32, %arg1: i32, %arg2: memref<2x32x256xf32, #tpu.memory_space<vmem>>, %arg3: memref<32x2xf32, #tpu.memory_space<vmem>>, %arg4: memref<1x2xf32, #tpu.memory_space<vmem>>, %arg5: memref<2x32xf32, #tpu.memory_space<vmem>>, %arg6: memref<1x32xf32, #tpu.memory_space<vmem>>, %arg7: memref<2x32xf32, #tpu.memory_space<vmem>>, %arg8: memref<2x32xf32, #tpu.memory_space<vmem>>) attributes {dimension_semantics = [#tpu.dimension_semantics<parallel>, #tpu.dimension_semantics<arbitrary>], iteration_bounds = array<i64: 1, 1>, scalar_prefetch = 0 : i64, scratch_operands = 1 : i64, tpu.core_type = #tpu.core_type<tc>, window_params = [{transform_indices = @transform_0, window_bounds = array<i64: 2, 32, 256>}, {pipeline_mode = #tpu.pipeline_mode<synchronous>, transform_indices = @transform_1, window_bounds = array<i64: 32, 2>}, {pipeline_mode = #tpu.pipeline_mode<synchronous>, transform_indices = @transform_2, window_bounds = array<i64: 1, 2>}, {pipeline_mode = #tpu.pipeline_mode<synchronous>, transform_indices = @transform_3, window_bounds = array<i64: 2, 32>}, {pipeline_mode = #tpu.pipeline_mode<synchronous>, transform_indices = @transform_4, window_bounds = array<i64: 1, 32>}, {transform_indices = @transform_5, window_bounds = array<i64: 2, 32>}]} {
    %c0_i32 = arith.constant 0 : i32
    %0 = arith.cmpi eq, %arg1, %c0_i32 : i32
    %1 = arith.extui %0 : i1 to i32
    %c0_i32_0 = arith.constant 0 : i32
    %2 = arith.cmpi ne, %1, %c0_i32_0 : i32
    scf.if %2 {
      %cst_9 = arith.constant 0.000000e+00 : f32
      %11 = vector.broadcast %cst_9 : f32 to vector<2x32xf32>
      %c0_10 = arith.constant 0 : index
      %c0_11 = arith.constant 0 : index
      %12 = vector.load %arg8[%c0_10, %c0_11] : memref<2x32xf32, #tpu.memory_space<vmem>>, vector<2x32xf32>
      tpu.vector_store %arg8[%c0_10, %c0_11], %11 {strides = array<i32>} : memref<2x32xf32, #tpu.memory_space<vmem>>, vector<2x32xf32>,
    } else {
    }
    %c0 = arith.constant 0 : index
    %c0_1 = arith.constant 0 : index
    %c0_2 = arith.constant 0 : index
    %3 = vector.load %arg2[%c0, %c0_1, %c0_2] : memref<2x32x256xf32, #tpu.memory_space<vmem>>, vector<2x32x256xf32>
    %c0_3 = arith.constant 0 : index
    %c0_4 = arith.constant 0 : index
    %4 = vector.load %arg8[%c0_3, %c0_4] : memref<2x32xf32, #tpu.memory_space<vmem>>, vector<2x32xf32>
    %cst = arith.constant dense<0.000000e+00> : vector<2x32xf32>
    %5 = vector.multi_reduction <add>, %3, %cst [2] : vector<2x32x256xf32> to vector<2x32xf32>
    %6 = arith.addf %4, %5 : vector<2x32xf32>
    %c0_5 = arith.constant 0 : index
    %c0_6 = arith.constant 0 : index
    %7 = vector.load %arg8[%c0_5, %c0_6] : memref<2x32xf32, #tpu.memory_space<vmem>>, vector<2x32xf32>
    tpu.vector_store %arg8[%c0_5, %c0_6], %6 {strides = array<i32>} : memref<2x32xf32, #tpu.memory_space<vmem>>, vector<2x32xf32>,
    %c0_i32_7 = arith.constant 0 : i32
    %8 = arith.cmpi eq, %arg1, %c0_i32_7 : i32
    %9 = arith.extui %8 : i1 to i32
    %c0_i32_8 = arith.constant 0 : i32
    %10 = arith.cmpi ne, %9, %c0_i32_8 : i32
    scf.if %10 {
      %c0_9 = arith.constant 0 : index
      %c0_10 = arith.constant 0 : index
      %11 = vector.load %arg8[%c0_9, %c0_10] : memref<2x32xf32, #tpu.memory_space<vmem>>, vector<2x32xf32>
      %cst_11 = arith.constant 3.906250e-03 : f32
      %12 = vector.broadcast %cst_11 : f32 to vector<2x32xf32>
      %13 = arith.mulf %11, %12 : vector<2x32xf32>
      %c0_12 = arith.constant 0 : index
      %c0_13 = arith.constant 0 : index
      %14 = vector.load %arg3[%c0_12, %c0_13] : memref<32x2xf32, #tpu.memory_space<vmem>>, vector<32x2xf32>
      %cst_14 = arith.constant dense<0.000000e+00> : vector<2x2xf32>
      %15 = tpu.matmul %13, %14, %cst_14 {dimension_numbers = #tpu.dot_dimension_numbers<[1], [0], [0], [1], [0, 0, 1, 1], [], []>} : vector<2x32xf32>, vector<32x2xf32>, vector<2x2xf32> -> vector<2x2xf32>
      %c0_15 = arith.constant 0 : index
      %c0_16 = arith.constant 0 : index
      %16 = vector.load %arg4[%c0_15, %c0_16] : memref<1x2xf32, #tpu.memory_space<vmem>>, vector<1x2xf32>
      %17 = vector.broadcast %16 : vector<1x2xf32> to vector<2x2xf32>
      %18 = arith.addf %15, %17 : vector<2x2xf32>
      %cst_17 = arith.constant 0.000000e+00 : f32
      %19 = vector.broadcast %cst_17 : f32 to vector<2x2xf32>
      %20 = arith.maximumf %18, %19 : vector<2x2xf32>
      %c0_18 = arith.constant 0 : index
      %c0_19 = arith.constant 0 : index
      %21 = vector.load %arg5[%c0_18, %c0_19] : memref<2x32xf32, #tpu.memory_space<vmem>>, vector<2x32xf32>
      %cst_20 = arith.constant dense<0.000000e+00> : vector<2x32xf32>
      %22 = tpu.matmul %20, %21, %cst_20 {dimension_numbers = #tpu.dot_dimension_numbers<[1], [0], [0], [1], [0, 0, 1, 1], [], []>} : vector<2x2xf32>, vector<2x32xf32>, vector<2x32xf32> -> vector<2x32xf32>
      %c0_21 = arith.constant 0 : index
      %c0_22 = arith.constant 0 : index
      %23 = vector.load %arg6[%c0_21, %c0_22] : memref<1x32xf32, #tpu.memory_space<vmem>>, vector<1x32xf32>
      %24 = vector.broadcast %23 : vector<1x32xf32> to vector<2x32xf32>
      %25 = arith.addf %22, %24 : vector<2x32xf32>
      %26 = arith.negf %25 : vector<2x32xf32>
      %27 = math.exp %26 : vector<2x32xf32>
      %cst_23 = arith.constant 1.000000e+00 : f32
      %28 = vector.broadcast %cst_23 : f32 to vector<2x32xf32>
      %29 = arith.addf %28, %27 : vector<2x32xf32>
      %30 = arith.divf %28, %29 : vector<2x32xf32>
      %c0_24 = arith.constant 0 : index
      %c0_25 = arith.constant 0 : index
      %31 = vector.load %arg7[%c0_24, %c0_25] : memref<2x32xf32, #tpu.memory_space<vmem>>, vector<2x32xf32>
      tpu.vector_store %arg7[%c0_24, %c0_25], %30 {strides = array<i32>} : memref<2x32xf32, #tpu.memory_space<vmem>>, vector<2x32xf32>,
    } else {
    }
    return
  }
  func.func @transform_0(%arg0: i32, %arg1: i32) -> (i32, i32, i32) {
    %c0_i32 = arith.constant 0 : i32
    %c0_i32_0 = arith.constant 0 : i32
    return %arg0, %c0_i32, %arg1 : i32, i32, i32
  }
  func.func @transform_1(%arg0: i32, %arg1: i32) -> (i32, i32) {
    %c0_i32 = arith.constant 0 : i32
    %c0_i32_0 = arith.constant 0 : i32
    %c0_i32_1 = arith.constant 0 : i32
    return %c0_i32, %c0_i32_0 : i32, i32
  }
  func.func @transform_2(%arg0: i32, %arg1: i32) -> (i32, i32) {
    %c0_i32 = arith.constant 0 : i32
    %c0_i32_0 = arith.constant 0 : i32
    %c0_i32_1 = arith.constant 0 : i32
    return %c0_i32, %c0_i32_0 : i32, i32
  }
  func.func @transform_3(%arg0: i32, %arg1: i32) -> (i32, i32) {
    %c0_i32 = arith.constant 0 : i32
    %c0_i32_0 = arith.constant 0 : i32
    %c0_i32_1 = arith.constant 0 : i32
    return %c0_i32, %c0_i32_0 : i32, i32
  }
  func.func @transform_4(%arg0: i32, %arg1: i32) -> (i32, i32) {
    %c0_i32 = arith.constant 0 : i32
    %c0_i32_0 = arith.constant 0 : i32
    %c0_i32_1 = arith.constant 0 : i32
    return %c0_i32, %c0_i32_0 : i32, i32
  }
  func.func @transform_5(%arg0: i32, %arg1: i32) -> (i32, i32) {
    %c0_i32 = arith.constant 0 : i32
    %c0_i32_0 = arith.constant 0 : i32
    return %arg0, %c0_i32 : i32, i32
  }
}

</mosaic_0001>

<bundles_post_ra>
// kernel: tpu_custom_call.1
= control target key start
LH: loop header
LB: loop body
LE: loop exit
PB: predicated region body
PF: predicated region fallthrough
CT: control target
= control target key end

     0   :  { %10 = vsyncpa [#allocation4], 0  ;;  %s490_s0 = inlined_call_operand.hbm [shape: f32[2,32,256], index: 0, kind: input, shape index: {}]   ;;  %s491_s1 = inlined_call_operand.vmem [shape: f32[32,2], index: 1, kind: input, shape index: {}]   ;;  %s492_s2 = inlined_call_operand.vmem [shape: f32[1,2], index: 2, kind: input, shape index: {}]   ;;  %s493_s3 = inlined_call_operand.vmem [shape: f32[2,32], index: 3, kind: input, shape index: {}]   ;;  %s494_s4 = inlined_call_operand.vmem [shape: f32[1,32], index: 4, kind: input, shape index: {}]   ;;  %s495_s5 = inlined_call_operand.hbm [shape: f32[2,32], index: 5, kind: output, shape index: {}]  }
   0x1   :  { %11 = vsyncpa [#allocation5], 0  ;;  %s424_s18 = smov [#allocation3]  }
   0x2   :  { %s17_s19 = sshll.u32 %s424_s18, 4  ;;  %s18_s19 = int_to_ptr.vmem [resolvable:$true] %s17_s19 }
   0x3   :  { %s388_s20 = scalar_lea.vmem %s18_s19, 2048  ;;  %p393_p1 = scmp.lt.s32.totalorder %s18_s19, %s18_s19 }
   0x4   :  { %p389_p0 = scmp.ne.s32.totalorder %s18_s19, %s388_s20  ;;  %p394_p2 = scmp.lt.s32.totalorder %s388_s20, %s388_s20 }
   0x6   :  { %p395_p3 = por %p394_p2, %p393_p1 }
   0x8   :  { %p396_p4 = pnand %p395_p3, %p389_p0 }
   0xa   :  { %399 = shalt.err (!%p396_p4)
}
   0xb   :  { %s425_s21 = smov 256   ;;  %s426_s22 = smov 16  }
   0xc   :  { %23 = dma.hbm_to_vmem [thread:$0]  %s490_s0, 2048, %s18_s19, [#allocation4], %s425_s21, %s425_s21, %s426_s22  }
   0xd   :  { %420 = dma.done.wait [#allocation4], 2048  }
   0xe   :  { %421 = vsyncadd [#allocation4], 4294965248  ;;  %v49_v0 = vld [vmem:[#allocation3 + $0x40] sm:$0xff]  ;;  %v50_v1 = vld [vmem:[#allocation3 + $0x48] sm:$0xff]  ;;  %vm39_vm0 = vcmask 254976   ;;  %v427_v24 = vmov 0.0   ;;  %v90_v29 = vlaneseq }
   0xf   :  { %v41_v2 = vld [vmem:[#allocation3] sm:$0xff]  ;;  %v70_v3 = vadd.f32 %v50_v1, %v49_v0  ;;  %v42_v4 = vld [vmem:[#allocation3 + $0x8] sm:$0xff]  ;;  %v51_v5 = vld [vmem:[#allocation3 + $0x50] sm:$0xff]  ;;  %40 = vst.msk [vmem:[#allocation2] sm:$0x3] %vm39_vm0, %v427_v24  ;;  %354 = vmatprep.subr.mxu0 %v427_v24  ;;  %365 = vmatprep.subr.mxu1 %v427_v24  ;;  %vm428_vm1 = vmmov 0  }
  0x10   :  { %v52_v6 = vld [vmem:[#allocation3 + $0x58] sm:$0xff]  ;;  %v58_v7 = vadd.f32 %v42_v4, %v41_v2  ;;  %v43_v8 = vld [vmem:[#allocation3 + $0x10] sm:$0xff]  ;;  %v53_v12 = vld [vmem:[#allocation3 + $0x60] sm:$0xff]  ;;  %362 = vmatprep.mubr.msk.f32.mxu0 %vm428_vm1, %v427_v24  ;;  %367 = vmatprep.mubr.msk.f32.mxu1 %vm428_vm1, %v427_v24  ;;  %v91_v30 = vand.u32 127, %v90_v29  ;;  %v93_v35 = vshrl.u32 %v90_v29, 7  ;;  %vm101_vm2 = vcmask 130112  }
  0x11   :  { %v44_v9 = vld [vmem:[#allocation3 + $0x18] sm:$0xff]  ;;  %71 = vadd.xlane.f32.xlu1 %v70_v3  ;;  %v73_v10 = vadd.f32 %v52_v6, %v51_v5  ;;  %v54_v13 = vld [vmem:[#allocation3 + $0x68] sm:$0xff]  ;;  %v45_v14 = vld [vmem:[#allocation3 + $0x20] sm:$0xff]  ;;  %vm108_vm3 = vcmask 195712   ;;  %vm115_vm4 = vcmask 261312   ;;  %vm136_vm5 = vcmask 1041409  }
  0x12   :  { %59 = vadd.xlane.f32.xlu0 %v58_v7  ;;  %v61_v11 = vadd.f32 %v44_v9, %v43_v8  ;;  %v46_v15 = vld [vmem:[#allocation3 + $0x28] sm:$0xff]  ;;  %v76_v16 = vadd.f32 %v54_v13, %v53_v12  ;;  %v55_v18 = vld [vmem:[#allocation3 + $0x70] sm:$0xff]  ;;  %v56_v19 = vld [vmem:[#allocation3 + $0x78] sm:$0xff]  ;;  %v96_v33 = vadd.s32 4294967288, %v91_v30  ;;  %v103_v34 = vadd.s32 4294967280, %v91_v30 }
  0x13   :  { %v64_v17 = vadd.f32 %v46_v15, %v45_v14  ;;  %v47_v20 = vld [vmem:[#allocation3 + $0x30] sm:$0xff]  ;;  %v48_v21 = vld [vmem:[#allocation3 + $0x38] sm:$0xff]  ;;  %v79_v22 = vadd.f32 %v56_v19, %v55_v18  ;;  %v148_v27 = vld [vmem:[%s491_s1 + $0x8] sm:$0xff]  ;;  %v110_v39 = vadd.s32 4294967272, %v91_v30  ;;  %v94_v41 = vsub.s32 %v91_v30, %v93_v35 }
  0x14   :  { %v67_v23 = vadd.f32 %v48_v21, %v47_v20  ;;  %v150_v25 = vld [vmem:[%s491_s1 + $0x18] sm:$0xff]  ;;  %v149_v26 = vld [vmem:[%s491_s1 + $0x10] sm:$0xff]  ;;  %v147_v28 = vld [vmem:[%s491_s1] sm:$0xff]  ;;  %v99_v37 = vsub.s32 %v96_v33, %v93_v35  ;;  %v106_v40 = vsub.s32 %v103_v34, %v93_v35  ;;  %vm158_vm6 = vcmask 261120  }
  0x15   :  { %74 = vadd.xlane.f32.xlu1 %v73_v10  ;;  %355 = vmatpush3.msra.mxu0 %v150_v25  ;;  %v113_v45 = vsub.s32 %v110_v39, %v93_v35  ;;  %v233_v2 = vld [vmem:[%s493_s3] sm:$0x3]  ;;  %vm245_vm7 = vcmask 1041408   ;;  %vm241_vm8 = vcmask 15360   ;;  %s429_s3 = smov [#allocation6]  }
  0x16   :  { %62 = vadd.xlane.f32.xlu0 %v61_v11  ;;  %356 = vmatprep.subr.mxu0 %v427_v24  ;;  %v57_v60 = vld [vmem:[#allocation2] sm:$0x3] }
  0x17   :  { %357 = vmatpush3.msra.mxu0 %v149_v26  ;;  %366 = vmatpush3.msk.msra.mxu1 %vm245_vm7, %v233_v2  ;;  %v341_v3 = vld [vmem:[%s492_s2] ss:$0 sm:$0xff]  ;;  %s332_s2 = sshll.u32 %s429_s3, 4  ;;  %s333_s2 = int_to_ptr.vmem [resolvable:$true] %s332_s2 }
  0x18   :  { %358 = vmatprep.subr.mxu0 %v427_v24  ;;  %v343_v8 = vld [vmem:[%s494_s4] ss:$0 sm:$0xff]  ;;  %s400_s12 = scalar_lea.vmem %s333_s2, 32  ;;  %p405_p6 = scmp.lt.s32.totalorder %s333_s2, %s333_s2 }
  0x19   :  { %77 = vadd.xlane.f32.xlu1 %v76_v16  ;;  %359 = vmatpush3.msra.mxu0 %v148_v27  ;;  %p401_p5 = scmp.ne.s32.totalorder %s333_s2, %s400_s12  ;;  %p406_p7 = scmp.lt.s32.totalorder %s400_s12, %s400_s12 }
  0x1a   :  { %65 = vadd.xlane.f32.xlu0 %v64_v17  ;;  %360 = vmatprep.subr.mxu0 %v427_v24 }
  0x1b   :  { %361 = vmatpush3.msra.mxu0 %v147_v28  ;;  %p407_p8 = por %p406_p7, %p405_p6 }
  0x1d   :  { %80 = vadd.xlane.f32.xlu1 %v79_v22  ;;  %p408_p9 = pnand %p407_p8, %p401_p5 }
  0x1e   :  { %68 = vadd.xlane.f32.xlu0 %v67_v23 }
  0x9a   :  { %v72_v31 = vpop.xlane.xlu1 %71 }
  0x9b   :  { %v60_v32 = vpop.xlane.xlu0 %59  ;;  %v120_v48 = vrot.slane %v72_v31, %v94_v41 }
  0x9c   :  { %v95_v50 = vrot.slane %v60_v32, %v94_v41 }
  0x9e   :  { %v75_v36 = vpop.xlane.xlu1 %74 }
  0x9f   :  { %v63_v38 = vpop.xlane.xlu0 %62  ;;  %v124_v43 = vrot.slane %v75_v36, %v99_v37 }
  0xa0   :  { %v100_v46 = vrot.slane %v63_v38, %v99_v37 }
  0xa1   :  { %v125_v52 = vsel %vm101_vm2, %v124_v43, %v120_v48 }
  0xa2   :  { %v78_v42 = vpop.xlane.xlu1 %77  ;;  %v102_v55 = vsel %vm101_vm2, %v100_v46, %v95_v50 }
  0xa3   :  { %v66_v44 = vpop.xlane.xlu0 %65  ;;  %v129_v47 = vrot.slane %v78_v42, %v106_v40 }
  0xa4   :  { %v107_v49 = vrot.slane %v66_v44, %v106_v40 }
  0xa5   :  { %v130_v56 = vsel %vm108_vm3, %v129_v47, %v125_v52 }
  0xa6   :  { %v81_v51 = vpop.xlane.xlu1 %80  ;;  %v109_v58 = vsel %vm108_vm3, %v107_v49, %v102_v55 }
  0xa7   :  { %v134_v53 = vrot.slane %v81_v51, %v113_v45  ;;  %v69_v54 = vpop.xlane.xlu0 %68 }
  0xa8   :  { %v114_v57 = vrot.slane %v69_v54, %v113_v45 }
  0xa9   :  { %v135_v59 = vsel %vm115_vm4, %v134_v53, %v130_v56 }
  0xaa   :  { %v116_v61 = vsel %vm115_vm4, %v114_v57, %v109_v58 }
  0xab   :  { %v137_v62 = vsel %vm136_vm5, %v135_v59, %v116_v61 }
  0xac   :  { %v139_v63 = vadd.f32 %v137_v62, %v57_v60 }
  0xae   :  { %141 = vst.msk [vmem:[#allocation2] sm:$0x3] %vm39_vm0, %v139_v63 }
  0xb5   :  { %v145_v0 = vld [vmem:[#allocation2] sm:$0x3] }
  0xb6   :  { %v146_v1 = vmul.f32 0.00390625, %v145_v0 }
  0xb8   :  { %363 = vmatmul.mubr.msk.f32.vlgmr.msra.gmra.mxu0 %vm158_vm6, %v146_v1 }
 0x178   :  { %v228_v4 = vpop.f32.mrf.mxu0 }
 0x179   :  { %v229_v5 = vadd.f32 %v341_v3, %v228_v4 }
 0x17a   :  { %v364_v6 = vpop.f32.mrf.mxu0 }
 0x17b   :  { %v232_v7 = vmax.f32 %v229_v5, 0.0 }
 0x17d   :  { %368 = vmatmul.mubr.msk.f32.vlgmr.msra.gmra.mxu1 %vm241_vm8, %v232_v7 }
 0x23d   :  { %v315_v9 = vpop.f32.mrf.mxu1 }
 0x23e   :  { %v316_v10 = vadd.f32 %v343_v8, %v315_v9 }
 0x23f   :  { %v369_v11 = vpop.f32.mrf.mxu1 }
 0x240   :  { %v346_v12 = vmul.f32 -1.442695, %v316_v10 }
 0x242   :  { %376 = vpow2.f32 %v346_v12 }
 0x24f   :  { %v377_v13 = vpop.eup %376 }
 0x250   :  { %v322_v14 = vadd.f32 1.0, %v377_v13 }
 0x252   :  { %378 = vrcp.f32 %v322_v14 }
 0x25f   :  { %v379_v15 = vpop.eup %378 }
 0x260   :  { %325 = vst.msk [vmem:[#allocation6] sm:$0x3] %vm39_vm0, %v379_v15 }
 0x261   :  { %411 = shalt.err (!%p408_p9)
}
 0x262   :  { %335 = dma.vmem_to_hbm [thread:$0]  %s333_s2, 32, %s495_s5, [#allocation5]  }
 0x263   :  { %422 = dma.done.wait [#allocation5], 32  }
 0x264   :  { %423 = vsyncadd [#allocation5], 4294967264 }
 0x265   :  { %339 = vsyncpa [#allocation4], 1 }
 0x266   :  { %340 = vsyncpa [#allocation5], 1 }

</bundles_post_ra>
